<compile_context>
chip_gen: v6e
topology: v6e:2x2x1
jax: 0.10.0
libtpu: 0.0.40
codegen_flags: <defaults>
</compile_context>

<pallas_src>
import jax
import jax.numpy as jnp
from jax.experimental import pallas as pl
from jax.experimental.pallas import tpu as pltpu


def rnn_kernel(x_ref, w_ref, hseq_ref):
    """x_ref: (seq_len, input_size); w_ref: (input_size, hidden_size);
       hseq_ref: (seq_len, hidden_size)."""
    # Single MXU matmul (f32 accumulation) + tanh on the EUP. No in-kernel slicing,
    # no broadcast chain, single output store.
    hseq_ref[...] = jnp.tanh(
        jnp.dot(x_ref[...], w_ref[...], preferred_element_type=jnp.float32)
    )


@jax.jit
def rnn_forward(x, W_ih):
    """x: (seq_len, batch_size, input_size) f32; W_ih: (input_size, hidden_size) f32."""
    seq_len, batch_size, input_size = x.shape
    hidden_size = W_ih.shape[1]

    # Batch selection outside the kernel body: the kernel's x input is already the
    # last-batch slab, so the DMA is halved and the body has no cross-sublane select.
    x_last = x[:, batch_size - 1, :]                    # (seq_len, input_size)

    vmem = pl.BlockSpec(memory_space=pltpu.MemorySpace.VMEM)

    io_bytes = 4 * (seq_len * input_size
                    + input_size * hidden_size
                    + seq_len * hidden_size)

    # Gridless single invocation: whole operands (<2 KiB) live in VMEM.
    h_seq = pl.pallas_call(
        rnn_kernel,
        out_shape=jax.ShapeDtypeStruct((seq_len, hidden_size), jnp.float32),
        in_specs=[vmem, vmem],
        out_specs=vmem,
        cost_estimate=pl.CostEstimate(
            flops=2 * seq_len * input_size * hidden_size,
            transcendentals=seq_len * hidden_size,
            bytes_accessed=io_bytes,
        ),
    )(x_last, W_ih)

    # Final hidden state: trivial slice, fused inside this jit region (no second
    # kernel output / masked partial store needed).
    h = h_seq[seq_len - 1]
    return h_seq, h


if __name__ == "__main__":
    # Small shapes consistent with the module's forward signature.
    seq_len, batch_size, input_size, hidden_size = 8, 2, 4, 32

    key = jax.random.PRNGKey(0)
    kx, kw = jax.random.split(key)

    x = jax.random.normal(kx, (seq_len, batch_size, input_size), dtype=jnp.float32)
    # W_ih ~ torch.rand(input_size, hidden_size): uniform [0, 1), deterministic here.
    W_ih = jax.random.uniform(kw, (input_size, hidden_size), dtype=jnp.float32)
    # b_ih = zeros(hidden_size) and W_hh exist in __init__ but are unused in forward.

    h_seq, h = rnn_forward(x, W_ih)
    h_seq = jax.block_until_ready(h_seq)
    h = jax.block_until_ready(h)

    # pure-JAX reference of the exact PyTorch semantics (h=None path)
    ref_h_seq = jnp.tanh(x[:, batch_size - 1, :] @ W_ih)
    ref_h = ref_h_seq[seq_len - 1]

    assert h_seq.shape == (seq_len, hidden_size)
    assert h.shape == (hidden_size,)
    assert jnp.allclose(h_seq, ref_h_seq, atol=1e-5, rtol=1e-5)
    assert jnp.allclose(h, ref_h, atol=1e-5, rtol=1e-5)

    print("KERNEL_OK")
</pallas_src>

<mosaic_0001>
module attributes {stable_mosaic.version = 11 : i64} {
  func.func @rnn_kernel(%arg0: memref<8x4xf32, #tpu.memory_space<vmem>>, %arg1: memref<4x32xf32, #tpu.memory_space<vmem>>, %arg2: memref<8x32xf32, #tpu.memory_space<vmem>>) attributes {dimension_semantics = [], scalar_prefetch = 0 : i64, scratch_operands = 0 : i64, tpu.core_type = #tpu.core_type<tc>} {
    %c0 = arith.constant 0 : index
    %c0_0 = arith.constant 0 : index
    %0 = vector.load %arg0[%c0, %c0_0] : memref<8x4xf32, #tpu.memory_space<vmem>>, vector<8x4xf32>
    %c0_1 = arith.constant 0 : index
    %c0_2 = arith.constant 0 : index
    %1 = vector.load %arg1[%c0_1, %c0_2] : memref<4x32xf32, #tpu.memory_space<vmem>>, vector<4x32xf32>
    %cst = arith.constant dense<0.000000e+00> : vector<8x32xf32>
    %2 = tpu.matmul %0, %1, %cst {dimension_numbers = #tpu.dot_dimension_numbers<[1], [0], [0], [1], [0, 0, 1, 1], [], []>} : vector<8x4xf32>, vector<4x32xf32>, vector<8x32xf32> -> vector<8x32xf32>
    %3 = math.tanh %2 : vector<8x32xf32>
    %c0_3 = arith.constant 0 : index
    %c0_4 = arith.constant 0 : index
    %4 = vector.load %arg2[%c0_3, %c0_4] : memref<8x32xf32, #tpu.memory_space<vmem>>, vector<8x32xf32>
    tpu.vector_store %arg2[%c0_3, %c0_4], %3 {strides = array<i32>} : memref<8x32xf32, #tpu.memory_space<vmem>>, vector<8x32xf32>,
    return
  }
}

</mosaic_0001>

<bundles_post_ra>
// kernel: rnn_forward.1
= control target key start
LH: loop header
LB: loop body
LE: loop exit
PB: predicated region body
PF: predicated region fallthrough
CT: control target
= control target key end

     0   :  { %vm17_vm0 = vcmask 1043456   ;;  %vm13_vm1 = vcmask 31744   ;;  %v111_v0 = vmov 0.0   ;;  %vm112_vm2 = vmmov 0   ;;  %s137_s1 = inlined_call_operand.vmem [shape: f32[4,32], index: 1, kind: input, shape index: {}]   ;;  %s138_s0 = inlined_call_operand.vmem [shape: f32[8,4], index: 0, kind: input, shape index: {}]   ;;  %s139_s2 = inlined_call_operand.vmem [shape: f32[8,32], index: 2, kind: output, shape index: {}]  }
   0x1   :  { %102 = vmatprep.subr.mxu0 %v111_v0  ;;  %v12_v1 = vld [vmem:[%s137_s1] sm:$0xf]  ;;  %104 = vmatprep.mubr.msk.f32.mxu0 %vm112_vm2, %v111_v0  ;;  %vm92_vm3 = vcmask 261120  }
   0x2   :  { %v11_v2 = vld [vmem:[%s138_s0] sm:$0xff]  ;;  %103 = vmatpush3.msk.msra.mxu0 %vm17_vm0, %v12_v1 }
   0x3   :  { %105 = vmatmul.mubr.msk.f32.vlgmr.msra.gmra.mxu0 %vm13_vm1, %v11_v2 }
  0xc3   :  { %v87_v3 = vpop.f32.mrf.mxu0 }
  0xc4   :  { %109 = vtanh.f32 %v87_v3 }
  0xc5   :  { %v106_v4 = vpop.f32.mrf.mxu0 }
  0xd1   :  { %v110_v5 = vpop.eup %109 }
  0xd2   :  { %93 = vst.msk [vmem:[%s139_s2] sm:$0xff] %vm92_vm3, %v110_v5 }

</bundles_post_ra>
